<compile_context>
chip_gen: v7x
topology: tpu7x:2x2x1
jax: 0.10.0
libtpu: 0.0.40
codegen_flags: <defaults>
</compile_context>

<pallas_src>
import jax
import jax.numpy as jnp
from jax import lax
from jax.experimental import pallas as pl
from jax.experimental.pallas import tpu as pltpu

# fixed laplacian weights (same as the PyTorch module's frozen conv weight)
_LAPLACIAN = (
    (0.125, 0.125, 0.125),
    (0.125, -1.0, 0.125),
    (0.125, 0.125, 0.125),
)


def _laplacian_sq_kernel(x_ref, o_ref):
    # x_ref: (H, W, Cb) channels-last block; o_ref: (Ho, Wo, Cb)
    x = x_ref[...].astype(jnp.float32)
    Ho = o_ref.shape[0]
    Wo = o_ref.shape[1]
    # Separable sum of the 3x3 neighborhood: 2 + 2 adds instead of 8.
    # W-direction slices are sublane offsets, H-direction slices are
    # outer-dim offsets -- no lane-direction data movement.
    row = x[:, 0:Wo, :] + x[:, 1:Wo + 1, :] + x[:, 2:Wo + 2, :]      # (H, Wo, Cb)
    s9 = row[0:Ho, :, :] + row[1:Ho + 1, :, :] + row[2:Ho + 2, :, :]  # (Ho, Wo, Cb)
    center = x[1:Ho + 1, 1:Wo + 1, :]
    # 8 off-center taps are 1/8, center is -1:
    #   conv = 0.125 * (s9 - center) - center = 0.125 * s9 - 1.125 * center
    acc = 0.125 * s9 - 1.125 * center
    o_ref[...] = (acc * acc).astype(o_ref.dtype)


def grad_forward(x):
    """x: (N, C, H, W) float32 -> (N, C, H-2, W-2) = (depthwise laplacian)**2"""
    N, C, H, W = x.shape
    Ho, Wo = H - 2, W - 2
    NC = N * C

    # Channels-last: channel axis lands on the 128-wide lane dimension.
    xt = jnp.transpose(x.reshape(NC, H, W), (1, 2, 0))               # (H, W, NC)

    # Channel block size: a multiple of 128 sized so that double-buffered
    # in+out blocks stay within a conservative scoped-VMEM budget (safe on
    # v7x's smaller VMEM), while keeping >= 2 grid steps when the channel
    # count allows so "parallel" can shard across TensorCores.
    bytes_per_128_chans = 2 * (H * W + Ho * Wo) * 4 * 128            # dbl-buffered, f32
    budget = 16 * 1024 * 1024
    total_units = (NC + 127) // 128                                  # 128-channel units
    cb_units = max(1, budget // bytes_per_128_chans)
    if total_units >= 2:
        cb_units = min(cb_units, max(1, total_units // 2))
    cb_units = max(1, min(cb_units, total_units))
    cb = cb_units * 128

    # Pad the channel axis up to a multiple of the channel block.
    Cpad = ((NC + cb - 1) // cb) * cb
    if Cpad != NC:
        xt = jnp.pad(xt, ((0, 0), (0, 0), (0, Cpad - NC)))

    # TODO(synk): for very large spatial extents, additionally tile H with a
    # 2-row halo instead of keeping the full (H, W) plane resident per block.

    out = pl.pallas_call(
        _laplacian_sq_kernel,
        out_shape=jax.ShapeDtypeStruct((Ho, Wo, Cpad), x.dtype),
        grid=(Cpad // cb,),
        in_specs=[pl.BlockSpec((H, W, cb), lambda i: (0, 0, i))],
        out_specs=pl.BlockSpec((Ho, Wo, cb), lambda i: (0, 0, i)),
        compiler_params=pltpu.CompilerParams(
            dimension_semantics=("parallel",)),
    )(xt)

    out = out[:, :, :NC]                                             # drop padding
    return jnp.transpose(out, (2, 0, 1)).reshape(N, C, Ho, Wo)


def _reference(x):
    # pure-JAX reference: depthwise conv2d (VALID) then square
    N, C, H, W = x.shape
    w = jnp.array(_LAPLACIAN, jnp.float32).reshape(1, 1, 3, 3)
    w = jnp.tile(w, (C, 1, 1, 1))  # (C, 1, 3, 3) like PyTorch grouped weight
    y = lax.conv_general_dilated(
        x, w, window_strides=(1, 1), padding="VALID",
        dimension_numbers=("NCHW", "OIHW", "NCHW"),
        feature_group_count=C)
    return y ** 2


if __name__ == "__main__":
    key = jax.random.PRNGKey(0)
    N, C, H, W = 2, 4, 16, 16
    x = jax.random.normal(key, (N, C, H, W), dtype=jnp.float32)

    y = grad_forward(x)
    y = jax.block_until_ready(y)

    y_ref = _reference(x)
    assert y.shape == (N, C, H - 2, W - 2)
    assert jnp.allclose(y, y_ref, atol=1e-5, rtol=1e-5)

    print("KERNEL_OK")
</pallas_src>

<mosaic_0001>
module attributes {stable_mosaic.version = 11 : i64} {
  func.func @_laplacian_sq_kernel(%arg0: i32, %arg1: memref<16x16x128xf32, #tpu.memory_space<vmem>>, %arg2: memref<14x14x128xf32, #tpu.memory_space<vmem>>) attributes {dimension_semantics = [#tpu.dimension_semantics<parallel>], iteration_bounds = array<i64: 1>, scalar_prefetch = 0 : i64, scratch_operands = 0 : i64, tpu.core_type = #tpu.core_type<tc>, window_params = [{transform_indices = @transform_0, window_bounds = array<i64: 16, 16, 128>}, {transform_indices = @transform_1, window_bounds = array<i64: 14, 14, 128>}]} {
    %c0 = arith.constant 0 : index
    %c0_0 = arith.constant 0 : index
    %c0_1 = arith.constant 0 : index
    %0 = vector.load %arg1[%c0, %c0_0, %c0_1] : memref<16x16x128xf32, #tpu.memory_space<vmem>>, vector<16x16x128xf32>
    %1 = vector.extract_strided_slice %0 {offsets = [0, 0, 0], sizes = [16, 14, 128], strides = [1, 1, 1]} : vector<16x16x128xf32> to vector<16x14x128xf32>
    %2 = vector.extract_strided_slice %0 {offsets = [0, 1, 0], sizes = [16, 14, 128], strides = [1, 1, 1]} : vector<16x16x128xf32> to vector<16x14x128xf32>
    %3 = arith.addf %1, %2 : vector<16x14x128xf32>
    %4 = vector.extract_strided_slice %0 {offsets = [0, 2, 0], sizes = [16, 14, 128], strides = [1, 1, 1]} : vector<16x16x128xf32> to vector<16x14x128xf32>
    %5 = arith.addf %3, %4 : vector<16x14x128xf32>
    %6 = vector.extract_strided_slice %5 {offsets = [0, 0, 0], sizes = [14, 14, 128], strides = [1, 1, 1]} : vector<16x14x128xf32> to vector<14x14x128xf32>
    %7 = vector.extract_strided_slice %5 {offsets = [1, 0, 0], sizes = [14, 14, 128], strides = [1, 1, 1]} : vector<16x14x128xf32> to vector<14x14x128xf32>
    %8 = arith.addf %6, %7 : vector<14x14x128xf32>
    %9 = vector.extract_strided_slice %5 {offsets = [2, 0, 0], sizes = [14, 14, 128], strides = [1, 1, 1]} : vector<16x14x128xf32> to vector<14x14x128xf32>
    %10 = arith.addf %8, %9 : vector<14x14x128xf32>
    %11 = vector.extract_strided_slice %0 {offsets = [1, 1, 0], sizes = [14, 14, 128], strides = [1, 1, 1]} : vector<16x16x128xf32> to vector<14x14x128xf32>
    %cst = arith.constant 1.250000e-01 : f32
    %12 = vector.broadcast %cst : f32 to vector<14x14x128xf32>
    %13 = arith.mulf %12, %10 : vector<14x14x128xf32>
    %cst_2 = arith.constant 1.125000e+00 : f32
    %14 = vector.broadcast %cst_2 : f32 to vector<14x14x128xf32>
    %15 = arith.mulf %14, %11 : vector<14x14x128xf32>
    %16 = arith.subf %13, %15 : vector<14x14x128xf32>
    %17 = arith.mulf %16, %16 : vector<14x14x128xf32>
    %c0_3 = arith.constant 0 : index
    %c0_4 = arith.constant 0 : index
    %c0_5 = arith.constant 0 : index
    %18 = vector.load %arg2[%c0_3, %c0_4, %c0_5] : memref<14x14x128xf32, #tpu.memory_space<vmem>>, vector<14x14x128xf32>
    tpu.vector_store %arg2[%c0_3, %c0_4, %c0_5], %17 {strides = array<i32>} : memref<14x14x128xf32, #tpu.memory_space<vmem>>, vector<14x14x128xf32>,
    return
  }
  func.func @transform_0(%arg0: i32) -> (i32, i32, i32) {
    %c0_i32 = arith.constant 0 : i32
    %c0_i32_0 = arith.constant 0 : i32
    %c0_i32_1 = arith.constant 0 : i32
    return %c0_i32, %c0_i32_0, %arg0 : i32, i32, i32
  }
  func.func @transform_1(%arg0: i32) -> (i32, i32, i32) {
    %c0_i32 = arith.constant 0 : i32
    %c0_i32_0 = arith.constant 0 : i32
    %c0_i32_1 = arith.constant 0 : i32
    return %c0_i32, %c0_i32_0, %arg0 : i32, i32, i32
  }
}

</mosaic_0001>

<bundles_post_ra>
// kernel: tpu_custom_call.1
= control target key start
LH: loop header
LB: loop body
LE: loop exit
PB: predicated region body
PF: predicated region fallthrough
CT: control target
= control target key end

     0   :  { %6 = vsyncpa [#allocation3], 0  ;;  %s772_s0 = inlined_call_operand.hbm [shape: f32[16,16,128], index: 0, kind: input, shape index: {}]   ;;  %s773_s1 = inlined_call_operand.hbm [shape: f32[14,14,128], index: 1, kind: output, shape index: {}]  }
   0x1   :  { %7 = vsyncpa [#allocation4], 0  ;;  %s676_s6 = smov [#allocation2]   ;;  %s628_s10 = scalar_lea.hbm %s772_s0, 4096 }
   0x2   :  { %s13_s7 = sshll.u32 %s676_s6, 4  ;;  %p629_p0 = scmp.ne.s32.totalorder %s772_s0, %s628_s10  ;;  %s14_s7 = int_to_ptr.vmem [resolvable:$true] %s13_s7 }
   0x3   :  { %p632_p1 = scmp.lt.u32.totalorder %s628_s10, %s772_s0 }
   0x5   :  { %p634_p2 = pnand %p632_p1, %p629_p0 }
   0x7   :  { %637 = shalt.err (!%p634_p2)
}
   0x8   :  { %s638_s15 = scalar_lea.vmem %s14_s7, 4096  ;;  %p643_p4 = scmp.lt.s32.totalorder %s14_s7, %s14_s7 }
   0x9   :  { %p639_p3 = scmp.ne.s32.totalorder %s14_s7, %s638_s15  ;;  %p644_p5 = scmp.lt.s32.totalorder %s638_s15, %s638_s15 }
   0xb   :  { %p645_p6 = por %p644_p5, %p643_p4 }
   0xd   :  { %p646_p7 = pnand %p645_p6, %p639_p3 }
   0xf   :  { %649 = shalt.err (!%p646_p7)
}
  0x10   :  { %s677_s16 = smov 128   ;;  %s678_s17 = smov 8  }
  0x11   :  { %19 = dma.hbm_to_vmem [thread:$0]  %s772_s0, 4096, %s14_s7, [#allocation3], %s677_s16, %s677_s16, %s678_s17  }
  0x12   :  { %672 = dma.done.wait [#allocation3], 4096  }
  0x13   :  { %673 = vsyncadd [#allocation3], 4294963200  ;;  %v23_v0 = vld [vmem:[#allocation2] sm:$0xff]  ;;  %v24_v1 = vld [vmem:[#allocation2 + $0x8] sm:$0xff]  ;;  %vm87_vm0 = vcmask 1046528   ;;  %vm200_vm1 = vcmask 1045504  }
  0x14   :  { %v25_v2 = vld [vmem:[#allocation2 + $0x10] sm:$0xff]  ;;  %v26_v3 = vld [vmem:[#allocation2 + $0x18] sm:$0xff]  ;;  %v27_v4 = vld [vmem:[#allocation2 + $0x20] sm:$0xff]  ;;  %v88_v6 = vrot.slane %v23_v0, 1  ;;  %v89_v7 = vrot.slane %v24_v1, 1  ;;  %v201_v12 = vrot.slane %v23_v0, 2 }
  0x15   :  { %v28_v5 = vld [vmem:[#allocation2 + $0x28] sm:$0xff]  ;;  %v91_v8 = vrot.slane %v25_v2, 1  ;;  %v92_v9 = vrot.slane %v26_v3, 1  ;;  %v94_v10 = vrot.slane %v27_v4, 1  ;;  %v202_v14 = vrot.slane %v24_v1, 2  ;;  %v29_v25 = vld [vmem:[#allocation2 + $0x30] sm:$0xff] }
  0x16   :  { %v95_v11 = vrot.slane %v28_v5, 1  ;;  %v90_v13 = vsel %vm87_vm0, %v88_v6, %v89_v7  ;;  %v204_v15 = vrot.slane %v25_v2, 2  ;;  %v205_v16 = vrot.slane %v26_v3, 2  ;;  %v30_v34 = vld [vmem:[#allocation2 + $0x38] sm:$0xff]  ;;  %v31_v55 = vld [vmem:[#allocation2 + $0x40] sm:$0xff]  ;;  %v32_v60 = vld [vmem:[#allocation2 + $0x48] sm:$0xff] }
  0x17   :  { %v93_v17 = vsel %vm87_vm0, %v91_v8, %v92_v9  ;;  %v168_v19 = vadd.f32 %v90_v13, %v23_v0  ;;  %v207_v20 = vrot.slane %v27_v4, 2  ;;  %v203_v23 = vsel %vm200_vm1, %v201_v12, %v202_v14  ;;  %s679_s0 = smov [#allocation5]  }
  0x18   :  { %v96_v18 = vsel %vm87_vm0, %v94_v10, %v95_v11  ;;  %v170_v21 = vadd.f32 %v93_v17, %v25_v2  ;;  %v206_v24 = vsel %vm200_vm1, %v204_v15, %v205_v16  ;;  %v208_v26 = vrot.slane %v28_v5, 2  ;;  %v716_v17 = vld [vmem:[#allocation2 + $0x50] sm:$0xff]  ;;  %s612_s20 = sshll.u32 %s679_s0, 4  ;;  %s613_s20 = int_to_ptr.vmem [resolvable:$true] %s612_s20 }
  0x19   :  { %v172_v22 = vadd.f32 %v96_v18, %v27_v4  ;;  %v281_v27 = vadd.f32 %v203_v23, %v168_v19  ;;  %v397_v28 = vmul.f32 1.125, %v25_v2  ;;  %v398_v29 = vmul.f32 1.125, %v26_v3  ;;  %s650_s21 = scalar_lea.vmem %s613_s20, 3584  ;;  %p655_p9 = scmp.lt.s32.totalorder %s613_s20, %s613_s20 }
  0x1a   :  { %v283_v30 = vadd.f32 %v206_v24, %v170_v21  ;;  %v169_v31 = vadd.f32 %v89_v7, %v24_v1  ;;  %v171_v32 = vadd.f32 %v92_v9, %v26_v3  ;;  %v173_v33 = vadd.f32 %v95_v11, %v28_v5  ;;  %p651_p8 = scmp.ne.s32.totalorder %s613_s20, %s650_s21  ;;  %p656_p10 = scmp.lt.s32.totalorder %s650_s21, %s650_s21 }
  0x1b   :  { %v209_v35 = vsel %vm200_vm1, %v207_v20, %v208_v26  ;;  %v453_v36 = vrot.slane %v397_v28, 1  ;;  %v454_v37 = vrot.slane %v398_v29, 1  ;;  %v97_v38 = vrot.slane %v29_v25, 1 }
  0x1c   :  { %v285_v39 = vadd.f32 %v209_v35, %v172_v22  ;;  %v313_v40 = vadd.f32 %v283_v30, %v281_v27  ;;  %v282_v41 = vadd.f32 %v202_v14, %v169_v31  ;;  %v284_v42 = vadd.f32 %v205_v16, %v171_v32  ;;  %v34_v22 = vld [vmem:[#allocation2 + $0x58] sm:$0xff]  ;;  %p657_p11 = por %p656_p10, %p655_p9 }
  0x1d   :  { %v455_v43 = vsel %vm87_vm0, %v453_v36, %v454_v37  ;;  %v286_v44 = vadd.f32 %v208_v26, %v173_v33  ;;  %v98_v45 = vrot.slane %v30_v34, 1  ;;  %v210_v46 = vrot.slane %v29_v25, 2 }
  0x1e   :  { %v341_v47 = vadd.f32 %v313_v40, %v285_v39  ;;  %v314_v48 = vadd.f32 %v284_v42, %v282_v41  ;;  %v211_v49 = vrot.slane %v30_v34, 2  ;;  %v315_v50 = vadd.f32 %v285_v39, %v283_v30  ;;  %p658_p12 = pnand %p657_p11, %p651_p8 }
  0x1f   :  { %v99_v51 = vsel %vm87_vm0, %v97_v38, %v98_v45  ;;  %v399_v52 = vmul.f32 1.125, %v27_v4  ;;  %v400_v53 = vmul.f32 1.125, %v28_v5  ;;  %v175_v54 = vadd.f32 %v98_v45, %v30_v34 }
  0x20   :  { %v369_v56 = vmul.f32 0.125, %v341_v47  ;;  %v342_v57 = vadd.f32 %v314_v48, %v286_v44  ;;  %v174_v58 = vadd.f32 %v99_v51, %v29_v25  ;;  %v212_v59 = vsel %vm200_vm1, %v210_v46, %v211_v49  ;;  %v36_v48 = vld [vmem:[#allocation2 + $0x68] sm:$0xff] }
  0x21   :  { %v456_v61 = vrot.slane %v399_v52, 1  ;;  %v457_v62 = vrot.slane %v400_v53, 1  ;;  %v288_v63 = vadd.f32 %v211_v49, %v175_v54  ;;  %v316_v0 = vadd.f32 %v286_v44, %v284_v42 }
  0x22   :  { %v523_v1 = vsub.f32 %v369_v56, %v455_v43  ;;  %v370_v2 = vmul.f32 0.125, %v342_v57  ;;  %v287_v3 = vadd.f32 %v212_v59, %v174_v58  ;;  %v100_v6 = vrot.slane %v31_v55, 1  ;;  %v35_v43 = vld [vmem:[#allocation2 + $0x60] sm:$0xff] }
  0x23   :  { %v458_v7 = vsel %vm87_vm0, %v456_v61, %v457_v62  ;;  %v344_v4 = vadd.f32 %v316_v0, %v288_v63  ;;  %v101_v5 = vrot.slane %v32_v60, 1  ;;  %v213_v8 = vrot.slane %v31_v55, 2 }
  0x24   :  { %v551_v9 = vmul.f32 %v523_v1, %v523_v1  ;;  %v524_v10 = vsub.f32 %v370_v2, %v454_v37  ;;  %v343_v11 = vadd.f32 %v315_v50, %v287_v3  ;;  %v214_v12 = vrot.slane %v32_v60, 2 }
  0x25   :  { %v372_v13 = vmul.f32 0.125, %v344_v4  ;;  %v102_v14 = vsel %vm87_vm0, %v100_v6, %v101_v5  ;;  %v317_v15 = vadd.f32 %v287_v3, %v285_v39  ;;  %v401_v16 = vmul.f32 1.125, %v29_v25  ;;  %v37_v4 = vld [vmem:[#allocation2 + $0x70] sm:$0xff] }
  0x26   :  { %579 = vst [vmem:[#allocation5] sm:$0xff] %v551_v9  ;;  %v552_v18 = vmul.f32 %v524_v10, %v524_v10  ;;  %v371_v19 = vmul.f32 0.125, %v343_v11  ;;  %v176_v20 = vadd.f32 %v102_v14, %v31_v55  ;;  %v215_v21 = vsel %vm200_vm1, %v213_v8, %v214_v12  ;;  %v38_v14 = vld [vmem:[#allocation2 + $0x78] sm:$0xff] }
  0x27   :  { %v526_v23 = vsub.f32 %v372_v13, %v457_v62  ;;  %v402_v24 = vmul.f32 1.125, %v30_v34  ;;  %v459_v26 = vrot.slane %v401_v16, 1  ;;  %v177_v27 = vadd.f32 %v101_v5, %v32_v60 }
  0x28   :  { %580 = vst [vmem:[#allocation5 + $0x8] sm:$0x3f] %v552_v18  ;;  %v525_v28 = vsub.f32 %v371_v19, %v458_v7  ;;  %v289_v29 = vadd.f32 %v215_v21, %v176_v20  ;;  %v318_v30 = vadd.f32 %v288_v63, %v286_v44  ;;  %v103_v31 = vrot.slane %v716_v17, 1 }
  0x29   :  { %v554_v25 = vmul.f32 %v526_v23, %v526_v23  ;;  %v460_v32 = vrot.slane %v402_v24, 1  ;;  %v290_v33 = vadd.f32 %v214_v12, %v177_v27  ;;  %v104_v35 = vrot.slane %v34_v22, 1 }
  0x2a   :  { %v553_v36 = vmul.f32 %v525_v28, %v525_v28  ;;  %v345_v37 = vadd.f32 %v317_v15, %v289_v29  ;;  %v216_v38 = vrot.slane %v716_v17, 2  ;;  %v217_v39 = vrot.slane %v34_v22, 2 }
  0x2b   :  { %582 = vst [vmem:[#allocation5 + $0x18] sm:$0x3f] %v554_v25  ;;  %v461_v34 = vsel %vm87_vm0, %v459_v26, %v460_v32  ;;  %v346_v40 = vadd.f32 %v318_v30, %v290_v33  ;;  %v105_v41 = vsel %vm87_vm0, %v103_v31, %v104_v35  ;;  %v319_v42 = vadd.f32 %v289_v29, %v287_v3 }
  0x2c   :  { %581 = vst [vmem:[#allocation5 + $0x10] sm:$0xff] %v553_v36  ;;  %v373_v44 = vmul.f32 0.125, %v345_v37  ;;  %v178_v45 = vadd.f32 %v105_v41, %v716_v17  ;;  %v218_v46 = vsel %vm200_vm1, %v216_v38, %v217_v39  ;;  %v403_v47 = vmul.f32 1.125, %v31_v55  ;;  %v39_v36 = vld [vmem:[#allocation2 + $0x80] sm:$0xff] }
  0x2d   :  { %v374_v49 = vmul.f32 0.125, %v346_v40  ;;  %v404_v50 = vmul.f32 1.125, %v32_v60  ;;  %v179_v51 = vadd.f32 %v104_v35, %v34_v22  ;;  %v320_v52 = vadd.f32 %v290_v33, %v288_v63  ;;  %v40_v40 = vld [vmem:[#allocation2 + $0x88] sm:$0xff] }
  0x2e   :  { %v527_v53 = vsub.f32 %v373_v44, %v461_v34  ;;  %v291_v54 = vadd.f32 %v218_v46, %v178_v45  ;;  %v462_v56 = vrot.slane %v403_v47, 1  ;;  %v106_v57 = vrot.slane %v35_v43, 1 }
  0x2f   :  { %v528_v58 = vsub.f32 %v374_v49, %v460_v32  ;;  %v463_v59 = vrot.slane %v404_v50, 1  ;;  %v292_v61 = vadd.f32 %v217_v39, %v179_v51  ;;  %v107_v62 = vrot.slane %v36_v48, 1 }
  0x30   :  { %v555_v0 = vmul.f32 %v527_v53, %v527_v53  ;;  %v347_v1 = vadd.f32 %v319_v42, %v291_v54  ;;  %v219_v2 = vrot.slane %v35_v43, 2  ;;  %v220_v3 = vrot.slane %v36_v48, 2 }
  0x31   :  { %v556_v6 = vmul.f32 %v528_v58, %v528_v58  ;;  %v464_v55 = vsel %vm87_vm0, %v462_v56, %v463_v59  ;;  %v348_v7 = vadd.f32 %v320_v52, %v292_v61  ;;  %v108_v60 = vsel %vm87_vm0, %v106_v57, %v107_v62 }
  0x32   :  { %583 = vst [vmem:[#allocation5 + $0x20] sm:$0xff] %v555_v0  ;;  %v375_v63 = vmul.f32 0.125, %v347_v1  ;;  %v180_v5 = vadd.f32 %v108_v60, %v35_v43  ;;  %v221_v8 = vsel %vm200_vm1, %v219_v2, %v220_v3  ;;  %v321_v9 = vadd.f32 %v291_v54, %v289_v29 }
  0x33   :  { %584 = vst [vmem:[#allocation5 + $0x28] sm:$0x3f] %v556_v6  ;;  %v376_v10 = vmul.f32 0.125, %v348_v7  ;;  %v405_v11 = vmul.f32 1.125, %v716_v17  ;;  %v406_v12 = vmul.f32 1.125, %v34_v22  ;;  %v181_v13 = vadd.f32 %v107_v62, %v36_v48 }
  0x34   :  { %v529_v15 = vsub.f32 %v375_v63, %v464_v55  ;;  %v293_v16 = vadd.f32 %v221_v8, %v180_v5  ;;  %v322_v18 = vadd.f32 %v292_v61, %v290_v33  ;;  %v109_v19 = vrot.slane %v37_v4, 1  ;;  %v42_v55 = vld [vmem:[#allocation2 + $0x98] sm:$0xff] }
  0x35   :  { %v530_v20 = vsub.f32 %v376_v10, %v463_v59  ;;  %v465_v21 = vrot.slane %v405_v11, 1  ;;  %v466_v23 = vrot.slane %v406_v12, 1  ;;  %v294_v24 = vadd.f32 %v220_v3, %v181_v13 }
  0x36   :  { %v557_v26 = vmul.f32 %v529_v15, %v529_v15  ;;  %v349_v27 = vadd.f32 %v321_v9, %v293_v16  ;;  %v110_v28 = vrot.slane %v38_v14, 1  ;;  %v222_v30 = vrot.slane %v37_v4, 2 }
  0x37   :  { %v558_v29 = vmul.f32 %v530_v20, %v530_v20  ;;  %v467_v31 = vsel %vm87_vm0, %v465_v21, %v466_v23  ;;  %v350_v25 = vadd.f32 %v322_v18, %v294_v24  ;;  %v223_v17 = vrot.slane %v38_v14, 2 }
  0x38   :  { %585 = vst [vmem:[#allocation5 + $0x30] sm:$0xff] %v557_v26  ;;  %v377_v22 = vmul.f32 0.125, %v349_v27  ;;  %v111_v32 = vsel %vm87_vm0, %v109_v19, %v110_v28  ;;  %v323_v35 = vadd.f32 %v293_v16, %v291_v54  ;;  %v407_v33 = vmul.f32 1.125, %v35_v43  ;;  %v43_v27 = vld [vmem:[#allocation2 + $0xa0] sm:$0xff] }
  0x39   :  { %586 = vst [vmem:[#allocation5 + $0x38] sm:$0x3f] %v558_v29  ;;  %v378_v37 = vmul.f32 0.125, %v350_v25  ;;  %v182_v38 = vadd.f32 %v111_v32, %v37_v4  ;;  %v224_v39 = vsel %vm200_vm1, %v222_v30, %v223_v17  ;;  %v408_v34 = vmul.f32 1.125, %v36_v48 }
  0x3a   :  { %v531_v41 = vsub.f32 %v377_v22, %v467_v31  ;;  %v468_v42 = vrot.slane %v407_v33, 1  ;;  %v183_v44 = vadd.f32 %v110_v28, %v38_v14  ;;  %v324_v45 = vadd.f32 %v294_v24, %v292_v61  ;;  %v41_v61 = vld [vmem:[#allocation2 + $0x90] sm:$0xff]  ;;  %v44_v31 = vld [vmem:[#allocation2 + $0xa8] sm:$0xff] }
  0x3b   :  { %v532_v46 = vsub.f32 %v378_v37, %v466_v23  ;;  %v295_v47 = vadd.f32 %v224_v39, %v182_v38  ;;  %v469_v49 = vrot.slane %v408_v34, 1  ;;  %v112_v50 = vrot.slane %v39_v36, 1 }
  0x3c   :  { %v559_v51 = vmul.f32 %v531_v41, %v531_v41  ;;  %v296_v52 = vadd.f32 %v223_v17, %v183_v44  ;;  %v113_v53 = vrot.slane %v40_v40, 1  ;;  %v225_v43 = vrot.slane %v39_v36, 2 }
  0x3d   :  { %v560_v54 = vmul.f32 %v532_v46, %v532_v46  ;;  %v351_v56 = vadd.f32 %v323_v35, %v295_v47  ;;  %v470_v57 = vsel %vm87_vm0, %v468_v42, %v469_v49  ;;  %v226_v58 = vrot.slane %v40_v40, 2 }
  0x3e   :  { %587 = vst [vmem:[#allocation5 + $0x40] sm:$0xff] %v559_v51  ;;  %v352_v48 = vadd.f32 %v324_v45, %v296_v52  ;;  %v114_v59 = vsel %vm87_vm0, %v112_v50, %v113_v53  ;;  %v325_v62 = vadd.f32 %v295_v47, %v293_v16  ;;  %v409_v0 = vmul.f32 1.125, %v37_v4  ;;  %v45_v51 = vld [vmem:[#allocation2 + $0xb0] sm:$0xff] }
  0x3f   :  { %588 = vst [vmem:[#allocation5 + $0x48] sm:$0x3f] %v560_v54  ;;  %v379_v1 = vmul.f32 0.125, %v351_v56  ;;  %v184_v2 = vadd.f32 %v114_v59, %v39_v36  ;;  %v227_v3 = vsel %vm200_vm1, %v225_v43, %v226_v58  ;;  %v410_v6 = vmul.f32 1.125, %v38_v14  ;;  %v46_v59 = vld [vmem:[#allocation2 + $0xb8] sm:$0xff] }
  0x40   :  { %v380_v7 = vmul.f32 0.125, %v352_v48  ;;  %v471_v60 = vrot.slane %v409_v0, 1  ;;  %v185_v63 = vadd.f32 %v113_v53, %v40_v40  ;;  %v326_v5 = vadd.f32 %v296_v52, %v294_v24 }
  0x41   :  { %v533_v8 = vsub.f32 %v379_v1, %v470_v57  ;;  %v297_v9 = vadd.f32 %v227_v3, %v184_v2  ;;  %v472_v10 = vrot.slane %v410_v6, 1  ;;  %v115_v11 = vrot.slane %v41_v61, 1 }
  0x42   :  { %v534_v12 = vsub.f32 %v380_v7, %v469_v49  ;;  %v298_v13 = vadd.f32 %v226_v58, %v185_v63  ;;  %v116_v15 = vrot.slane %v42_v55, 1  ;;  %v228_v4 = vrot.slane %v41_v61, 2 }
  0x43   :  { %v561_v16 = vmul.f32 %v533_v8, %v533_v8  ;;  %v353_v18 = vadd.f32 %v325_v62, %v297_v9  ;;  %v473_v19 = vsel %vm87_vm0, %v471_v60, %v472_v10  ;;  %v229_v20 = vrot.slane %v42_v55, 2 }
  0x44   :  { %v562_v21 = vmul.f32 %v534_v12, %v534_v12  ;;  %v354_v14 = vadd.f32 %v326_v5, %v298_v13  ;;  %v117_v23 = vsel %vm87_vm0, %v115_v11, %v116_v15  ;;  %v327_v26 = vadd.f32 %v297_v9, %v295_v47 }
  0x45   :  { %589 = vst [vmem:[#allocation5 + $0x50] sm:$0xff] %v561_v16  ;;  %v381_v24 = vmul.f32 0.125, %v353_v18  ;;  %v186_v28 = vadd.f32 %v117_v23, %v41_v61  ;;  %v230_v30 = vsel %vm200_vm1, %v228_v4, %v229_v20  ;;  %v411_v29 = vmul.f32 1.125, %v39_v36  ;;  %v47_v16 = vld [vmem:[#allocation2 + $0xc0] sm:$0xff] }
  0x46   :  { %590 = vst [vmem:[#allocation5 + $0x58] sm:$0x3f] %v562_v21  ;;  %v382_v25 = vmul.f32 0.125, %v354_v14  ;;  %v412_v17 = vmul.f32 1.125, %v40_v40  ;;  %v187_v22 = vadd.f32 %v116_v15, %v42_v55  ;;  %v328_v32 = vadd.f32 %v298_v13, %v296_v52  ;;  %v48_v14 = vld [vmem:[#allocation2 + $0xc8] sm:$0xff] }
  0x47   :  { %v535_v35 = vsub.f32 %v381_v24, %v473_v19  ;;  %v299_v33 = vadd.f32 %v230_v30, %v186_v28  ;;  %v474_v37 = vrot.slane %v411_v29, 1  ;;  %v118_v38 = vrot.slane %v43_v27, 1 }
  0x48   :  { %v536_v39 = vsub.f32 %v382_v25, %v472_v10  ;;  %v475_v34 = vrot.slane %v412_v17, 1  ;;  %v300_v41 = vadd.f32 %v229_v20, %v187_v22  ;;  %v119_v42 = vrot.slane %v44_v31, 1 }
  0x49   :  { %v563_v44 = vmul.f32 %v535_v35, %v535_v35  ;;  %v355_v45 = vadd.f32 %v327_v26, %v299_v33  ;;  %v231_v46 = vrot.slane %v43_v27, 2  ;;  %v232_v47 = vrot.slane %v44_v31, 2 }
  0x4a   :  { %v564_v49 = vmul.f32 %v536_v39, %v536_v39  ;;  %v476_v36 = vsel %vm87_vm0, %v474_v37, %v475_v34  ;;  %v356_v50 = vadd.f32 %v328_v32, %v300_v41  ;;  %v120_v40 = vsel %vm87_vm0, %v118_v38, %v119_v42 }
  0x4b   :  { %591 = vst [vmem:[#allocation5 + $0x60] sm:$0xff] %v563_v44  ;;  %v383_v52 = vmul.f32 0.125, %v355_v45  ;;  %v188_v53 = vadd.f32 %v120_v40, %v43_v27  ;;  %v233_v43 = vsel %vm200_vm1, %v231_v46, %v232_v47  ;;  %v329_v54 = vadd.f32 %v299_v33, %v297_v9 }
  0x4c   :  { %592 = vst [vmem:[#allocation5 + $0x68] sm:$0x3f] %v564_v49  ;;  %v384_v56 = vmul.f32 0.125, %v356_v50  ;;  %v413_v57 = vmul.f32 1.125, %v41_v61  ;;  %v414_v58 = vmul.f32 1.125, %v42_v55  ;;  %v189_v48 = vadd.f32 %v119_v42, %v44_v31 }
  0x4d   :  { %v537_v62 = vsub.f32 %v383_v52, %v476_v36  ;;  %v301_v0 = vadd.f32 %v233_v43, %v188_v53  ;;  %v330_v1 = vadd.f32 %v300_v41, %v298_v13  ;;  %v121_v2 = vrot.slane %v45_v51, 1  ;;  %v50_v36 = vld [vmem:[#allocation2 + $0xd8] sm:$0xff] }
  0x4e   :  { %v538_v3 = vsub.f32 %v384_v56, %v475_v34  ;;  %v477_v6 = vrot.slane %v413_v57, 1  ;;  %v478_v7 = vrot.slane %v414_v58, 1  ;;  %v302_v60 = vadd.f32 %v232_v47, %v189_v48 }
  0x4f   :  { %v565_v63 = vmul.f32 %v537_v62, %v537_v62  ;;  %v357_v5 = vadd.f32 %v329_v54, %v301_v0  ;;  %v122_v8 = vrot.slane %v46_v59, 1  ;;  %v234_v10 = vrot.slane %v45_v51, 2 }
  0x50   :  { %v566_v11 = vmul.f32 %v538_v3, %v538_v3  ;;  %v479_v9 = vsel %vm87_vm0, %v477_v6, %v478_v7  ;;  %v358_v12 = vadd.f32 %v330_v1, %v302_v60  ;;  %v235_v61 = vrot.slane %v46_v59, 2 }
  0x51   :  { %593 = vst [vmem:[#allocation5 + $0x70] sm:$0xff] %v565_v63  ;;  %v385_v55 = vmul.f32 0.125, %v357_v5  ;;  %v123_v15 = vsel %vm87_vm0, %v121_v2, %v122_v8  ;;  %v331_v4 = vadd.f32 %v301_v0, %v299_v33  ;;  %v415_v13 = vmul.f32 1.125, %v43_v27  ;;  %v51_v5 = vld [vmem:[#allocation2 + $0xe0] sm:$0xff] }
  0x52   :  { %594 = vst [vmem:[#allocation5 + $0x78] sm:$0x3f] %v566_v11  ;;  %v386_v18 = vmul.f32 0.125, %v358_v12  ;;  %v190_v19 = vadd.f32 %v123_v15, %v45_v51  ;;  %v236_v20 = vsel %vm200_vm1, %v234_v10, %v235_v61  ;;  %v416_v21 = vmul.f32 1.125, %v44_v31 }
  0x53   :  { %v539_v23 = vsub.f32 %v385_v55, %v479_v9  ;;  %v480_v26 = vrot.slane %v415_v13, 1  ;;  %v191_v24 = vadd.f32 %v122_v8, %v46_v59  ;;  %v332_v28 = vadd.f32 %v302_v60, %v300_v41  ;;  %v49_v41 = vld [vmem:[#allocation2 + $0xd0] sm:$0xff]  ;;  %v52_v9 = vld [vmem:[#allocation2 + $0xe8] sm:$0xff] }
  0x54   :  { %v540_v30 = vsub.f32 %v386_v18, %v478_v7  ;;  %v303_v29 = vadd.f32 %v236_v20, %v190_v19  ;;  %v481_v25 = vrot.slane %v416_v21, 1  ;;  %v124_v17 = vrot.slane %v47_v16, 1 }
  0x55   :  { %v567_v22 = vmul.f32 %v539_v23, %v539_v23  ;;  %v304_v32 = vadd.f32 %v235_v61, %v191_v24  ;;  %v125_v35 = vrot.slane %v48_v14, 1  ;;  %v237_v27 = vrot.slane %v47_v16, 2 }
  0x56   :  { %v568_v33 = vmul.f32 %v540_v30, %v540_v30  ;;  %v359_v37 = vadd.f32 %v331_v4, %v303_v29  ;;  %v482_v38 = vsel %vm87_vm0, %v480_v26, %v481_v25  ;;  %v238_v39 = vrot.slane %v48_v14, 2 }
  0x57   :  { %595 = vst [vmem:[#allocation5 + $0x80] sm:$0xff] %v567_v22  ;;  %v360_v31 = vadd.f32 %v332_v28, %v304_v32  ;;  %v126_v34 = vsel %vm87_vm0, %v124_v17, %v125_v35  ;;  %v333_v42 = vadd.f32 %v303_v29, %v301_v0  ;;  %v417_v44 = vmul.f32 1.125, %v45_v51  ;;  %v53_v22 = vld [vmem:[#allocation2 + $0xf0] sm:$0xff] }
  0x58   :  { %596 = vst [vmem:[#allocation5 + $0x88] sm:$0x3f] %v568_v33  ;;  %v387_v45 = vmul.f32 0.125, %v359_v37  ;;  %v192_v46 = vadd.f32 %v126_v34, %v47_v16  ;;  %v239_v47 = vsel %vm200_vm1, %v237_v27, %v238_v39  ;;  %v418_v49 = vmul.f32 1.125, %v46_v59  ;;  %v54_v34 = vld [vmem:[#allocation2 + $0xf8] sm:$0xff] }
  0x59   :  { %v388_v50 = vmul.f32 0.125, %v360_v31  ;;  %v483_v40 = vrot.slane %v417_v44, 1  ;;  %v193_v52 = vadd.f32 %v125_v35, %v48_v14  ;;  %v334_v53 = vadd.f32 %v304_v32, %v302_v60 }
  0x5a   :  { %v541_v43 = vsub.f32 %v387_v45, %v482_v38  ;;  %v305_v54 = vadd.f32 %v239_v47, %v192_v46  ;;  %v484_v56 = vrot.slane %v418_v49, 1  ;;  %v127_v57 = vrot.slane %v49_v41, 1 }
  0x5b   :  { %v542_v58 = vsub.f32 %v388_v50, %v481_v25  ;;  %v306_v48 = vadd.f32 %v238_v39, %v193_v52  ;;  %v128_v62 = vrot.slane %v50_v36, 1  ;;  %v240_v51 = vrot.slane %v49_v41, 2 }
  0x5c   :  { %v569_v0 = vmul.f32 %v541_v43, %v541_v43  ;;  %v361_v1 = vadd.f32 %v333_v42, %v305_v54  ;;  %v485_v2 = vsel %vm87_vm0, %v483_v40, %v484_v56  ;;  %v241_v3 = vrot.slane %v50_v36, 2 }
  0x5d   :  { %v570_v6 = vmul.f32 %v542_v58, %v542_v58  ;;  %v362_v59 = vadd.f32 %v334_v53, %v306_v48  ;;  %v129_v7 = vsel %vm87_vm0, %v127_v57, %v128_v62  ;;  %v335_v63 = vadd.f32 %v305_v54, %v303_v29 }
  0x5e   :  { %597 = vst [vmem:[#allocation5 + $0x90] sm:$0xff] %v569_v0  ;;  %v389_v60 = vmul.f32 0.125, %v361_v1  ;;  %v194_v8 = vadd.f32 %v129_v7, %v49_v41  ;;  %v242_v10 = vsel %vm200_vm1, %v240_v51, %v241_v3  ;;  %v419_v11 = vmul.f32 1.125, %v47_v16 }
  0x5f   :  { %598 = vst [vmem:[#allocation5 + $0x98] sm:$0x3f] %v570_v6  ;;  %v390_v12 = vmul.f32 0.125, %v362_v59  ;;  %v420_v61 = vmul.f32 1.125, %v48_v14  ;;  %v195_v55 = vadd.f32 %v128_v62, %v50_v36  ;;  %v336_v15 = vadd.f32 %v306_v48, %v304_v32 }
  0x60   :  { %v543_v4 = vsub.f32 %v389_v60, %v485_v2  ;;  %v307_v13 = vadd.f32 %v242_v10, %v194_v8  ;;  %v486_v18 = vrot.slane %v419_v11, 1  ;;  %v130_v19 = vrot.slane %v51_v5, 1 }
  0x61   :  { %v544_v20 = vsub.f32 %v390_v12, %v484_v56  ;;  %v487_v21 = vrot.slane %v420_v61, 1  ;;  %v308_v23 = vadd.f32 %v241_v3, %v195_v55  ;;  %v131_v26 = vrot.slane %v52_v9, 1 }
  0x62   :  { %v571_v24 = vmul.f32 %v543_v4, %v543_v4  ;;  %v363_v28 = vadd.f32 %v335_v63, %v307_v13  ;;  %v243_v30 = vrot.slane %v51_v5, 2  ;;  %v244_v29 = vrot.slane %v52_v9, 2 }
  0x63   :  { %v572_v25 = vmul.f32 %v544_v20, %v544_v20  ;;  %v488_v16 = vsel %vm87_vm0, %v486_v18, %v487_v21  ;;  %v364_v17 = vadd.f32 %v336_v15, %v308_v23  ;;  %v132_v14 = vsel %vm87_vm0, %v130_v19, %v131_v26 }
  0x64   :  { %599 = vst [vmem:[#allocation5 + $0xa0] sm:$0xff] %v571_v24  ;;  %v391_v32 = vmul.f32 0.125, %v363_v28  ;;  %v196_v35 = vadd.f32 %v132_v14, %v51_v5  ;;  %v245_v27 = vsel %vm200_vm1, %v243_v30, %v244_v29  ;;  %v337_v33 = vadd.f32 %v307_v13, %v305_v54 }
  0x65   :  { %600 = vst [vmem:[#allocation5 + $0xa8] sm:$0x3f] %v572_v25  ;;  %v392_v37 = vmul.f32 0.125, %v364_v17  ;;  %v421_v38 = vmul.f32 1.125, %v49_v41  ;;  %v422_v39 = vmul.f32 1.125, %v50_v36  ;;  %v197_v31 = vadd.f32 %v131_v26, %v52_v9 }
  0x66   :  { %v545_v42 = vsub.f32 %v391_v32, %v488_v16  ;;  %v309_v44 = vadd.f32 %v245_v27, %v196_v35  ;;  %v338_v45 = vadd.f32 %v308_v23, %v306_v48  ;;  %v133_v46 = vrot.slane %v53_v22, 1 }
  0x67   :  { %v546_v47 = vsub.f32 %v392_v37, %v487_v21  ;;  %v489_v49 = vrot.slane %v421_v38, 1  ;;  %v490_v50 = vrot.slane %v422_v39, 1  ;;  %v310_v40 = vadd.f32 %v244_v29, %v197_v31 }
  0x68   :  { %v573_v52 = vmul.f32 %v545_v42, %v545_v42  ;;  %v365_v53 = vadd.f32 %v337_v33, %v309_v44  ;;  %v134_v43 = vrot.slane %v54_v34, 1  ;;  %v246_v56 = vrot.slane %v53_v22, 2 }
  0x69   :  { %v574_v57 = vmul.f32 %v546_v47, %v546_v47  ;;  %v491_v54 = vsel %vm87_vm0, %v489_v49, %v490_v50  ;;  %v366_v58 = vadd.f32 %v338_v45, %v310_v40  ;;  %v247_v41 = vrot.slane %v54_v34, 2 }
  0x6a   :  { %601 = vst [vmem:[#allocation5 + $0xb0] sm:$0xff] %v573_v52  ;;  %v393_v36 = vmul.f32 0.125, %v365_v53  ;;  %v135_v62 = vsel %vm87_vm0, %v133_v46, %v134_v43  ;;  %v339_v51 = vadd.f32 %v309_v44, %v307_v13  ;;  %v423_v48 = vmul.f32 1.125, %v51_v5 }
  0x6b   :  { %602 = vst [vmem:[#allocation5 + $0xb8] sm:$0x3f] %v574_v57  ;;  %v394_v0 = vmul.f32 0.125, %v366_v58  ;;  %v198_v1 = vadd.f32 %v135_v62, %v53_v22  ;;  %v248_v2 = vsel %vm200_vm1, %v246_v56, %v247_v41  ;;  %v424_v3 = vmul.f32 1.125, %v52_v9 }
  0x6c   :  { %v547_v6 = vsub.f32 %v393_v36, %v491_v54  ;;  %v492_v59 = vrot.slane %v423_v48, 1  ;;  %v199_v7 = vadd.f32 %v134_v43, %v54_v34  ;;  %v340_v63 = vadd.f32 %v310_v40, %v308_v23 }
  0x6d   :  { %v548_v60 = vsub.f32 %v394_v0, %v490_v50  ;;  %v311_v8 = vadd.f32 %v248_v2, %v198_v1  ;;  %v493_v10 = vrot.slane %v424_v3, 1 }
  0x6e   :  { %v575_v11 = vmul.f32 %v547_v6, %v547_v6  ;;  %v312_v12 = vadd.f32 %v247_v41, %v199_v7 }
  0x6f   :  { %v576_v61 = vmul.f32 %v548_v60, %v548_v60  ;;  %v367_v55 = vadd.f32 %v339_v51, %v311_v8  ;;  %v494_v5 = vsel %vm87_vm0, %v492_v59, %v493_v10 }
  0x70   :  { %603 = vst [vmem:[#allocation5 + $0xc0] sm:$0xff] %v575_v11  ;;  %v368_v15 = vadd.f32 %v340_v63, %v312_v12 }
  0x71   :  { %604 = vst [vmem:[#allocation5 + $0xc8] sm:$0x3f] %v576_v61  ;;  %v395_v4 = vmul.f32 0.125, %v367_v55 }
  0x72   :  { %v396_v13 = vmul.f32 0.125, %v368_v15 }
  0x73   :  { %v549_v18 = vsub.f32 %v395_v4, %v494_v5 }
  0x74   :  { %v550_v9 = vsub.f32 %v396_v13, %v493_v10 }
  0x75   :  { %v577_v19 = vmul.f32 %v549_v18, %v549_v18 }
  0x76   :  { %v578_v20 = vmul.f32 %v550_v9, %v550_v9 }
  0x77   :  { %605 = vst [vmem:[#allocation5 + $0xd0] sm:$0xff] %v577_v19 }
  0x78   :  { %606 = vst [vmem:[#allocation5 + $0xd8] sm:$0x3f] %v578_v20 }
  0x79   :  { %661 = shalt.err (!%p658_p12)
}
  0x7a   :  { %s662_s24 = scalar_lea.hbm %s773_s1, 3584 }
  0x7b   :  { %p663_p13 = scmp.ne.s32.totalorder %s773_s1, %s662_s24  ;;  %p666_p0 = scmp.lt.u32.totalorder %s662_s24, %s773_s1 }
  0x7d   :  { %p668_p1 = pnand %p666_p0, %p663_p13 }
  0x7f   :  { %671 = shalt.err (!%p668_p1)
}
  0x80   :  { %618 = dma.vmem_to_hbm [thread:$0]  %s613_s20, 3584, %s773_s1, [#allocation4], %s677_s16, %s677_s16, %s678_s17  }
  0x81   :  { %674 = dma.done.wait [#allocation4], 3584  }
  0x82   :  { %675 = vsyncadd [#allocation4], 4294963712 }
  0x83   :  { %622 = vsyncpa [#allocation3], 1 }
  0x84   :  { %623 = vsyncpa [#allocation4], 1 }

</bundles_post_ra>
